<compile_context>
chip_gen: v7x
topology: tpu7x:2x2x1
jax: 0.10.0
libtpu: 0.0.40
codegen_flags: <defaults>
</compile_context>

<pallas_src>
import jax
import jax.numpy as jnp
from jax import lax
from jax.experimental import pallas as pl
from jax.experimental.pallas import tpu as pltpu

EPS = 1e-5
LANE = 128
SUBLANE = 8

# Conservative working-set budget / scoped-VMEM limit that fit every
# generation (v7x physical VMEM is only 64 MiB per TensorCore).
DEFAULT_VMEM_BUDGET = 24 * 1024 * 1024
DEFAULT_VMEM_LIMIT = 48 * 1024 * 1024


def _round_up(a, b):
    return -(-a // b) * b


# --------------------------------------------------------------------------
# Single-pass kernel: full batch per tile, fused sum / sum-of-squares stats.
# --------------------------------------------------------------------------
def _bn1d_fused_kernel(x_ref, gamma_ref, beta_ref, o_ref):
    x = x_ref[...].astype(jnp.float32)                  # (N, F_BLK)
    inv_n = 1.0 / x.shape[0]
    mean = jnp.sum(x, axis=0, keepdims=True) * inv_n    # (1, F_BLK)
    ex2 = jnp.sum(x * x, axis=0, keepdims=True) * inv_n
    var = jnp.maximum(ex2 - mean * mean, 0.0)           # clamp: E[x^2]-E[x]^2
    inv_std = lax.rsqrt(var + EPS)
    gamma = gamma_ref[...].astype(jnp.float32)
    beta = beta_ref[...].astype(jnp.float32)
    scale = gamma * inv_std                              # (1, F_BLK)
    shift = beta - mean * scale
    o_ref[...] = (x * scale + shift).astype(o_ref.dtype)


# --------------------------------------------------------------------------
# Two-pass kernels for very large N: stats (reduction over batch tiles), then
# normalize with precomputed per-feature scale / shift.
# --------------------------------------------------------------------------
def _bn1d_stats_kernel(x_ref, sum_ref, ssq_ref):
    i = pl.program_id(1)  # batch-reduction axis (last grid axis)

    @pl.when(i == 0)
    def _():
        sum_ref[...] = jnp.zeros_like(sum_ref)
        ssq_ref[...] = jnp.zeros_like(ssq_ref)

    x = x_ref[...].astype(jnp.float32)
    sum_ref[...] += jnp.sum(x, axis=0, keepdims=True)
    ssq_ref[...] += jnp.sum(x * x, axis=0, keepdims=True)


def _bn1d_norm_kernel(x_ref, scale_ref, shift_ref, o_ref):
    x = x_ref[...].astype(jnp.float32)
    o_ref[...] = (x * scale_ref[...] + shift_ref[...]).astype(o_ref.dtype)


# --------------------------------------------------------------------------
# Wrappers
# --------------------------------------------------------------------------
def _one_pass(x, gamma, beta, fb, vmem_limit):
    n, f = x.shape
    f_pad = _round_up(f, fb)
    if f_pad != f:
        x = jnp.pad(x, ((0, 0), (0, f_pad - f)))
        gamma = jnp.pad(gamma, (0, f_pad - f), constant_values=1.0)
        beta = jnp.pad(beta, (0, f_pad - f), constant_values=0.0)
    gamma2 = gamma.reshape(1, f_pad)
    beta2 = beta.reshape(1, f_pad)

    y = pl.pallas_call(
        _bn1d_fused_kernel,
        out_shape=jax.ShapeDtypeStruct((n, f_pad), x.dtype),
        grid_spec=pltpu.PrefetchScalarGridSpec(
            num_scalar_prefetch=0,
            grid=(f_pad // fb,),
            in_specs=[
                pl.BlockSpec((n, fb), lambda j: (0, j)),
                pl.BlockSpec((1, fb), lambda j: (0, j)),
                pl.BlockSpec((1, fb), lambda j: (0, j)),
            ],
            out_specs=pl.BlockSpec((n, fb), lambda j: (0, j)),
        ),
        compiler_params=pltpu.CompilerParams(
            dimension_semantics=("parallel",),
            vmem_limit_bytes=vmem_limit,
        ),
    )(x, gamma2, beta2)
    return y[:, :f] if f_pad != f else y


def _two_pass(x, gamma, beta, vmem_budget, vmem_limit):
    n, f = x.shape
    itemsize = jnp.dtype(x.dtype).itemsize

    fb = min(512, _round_up(f, LANE))
    f_pad = _round_up(f, fb)

    # Batch tile sized against the VMEM budget (double-buffered in/out + f32 temps).
    per_row = fb * (4 * itemsize + 12)
    nb = max(SUBLANE, (vmem_budget // per_row) // SUBLANE * SUBLANE)
    nb = min(nb, _round_up(n, SUBLANE))
    n_pad = _round_up(n, nb)

    pad_n, pad_f = n_pad - n, f_pad - f
    x_p = jnp.pad(x, ((0, pad_n), (0, pad_f))) if (pad_n or pad_f) else x
    g_p = jnp.pad(gamma, (0, pad_f), constant_values=1.0) if pad_f else gamma
    b_p = jnp.pad(beta, (0, pad_f), constant_values=0.0) if pad_f else beta

    fg, ng = f_pad // fb, n_pad // nb

    # Pass 1: per-feature sum / sum-of-squares (zero-padded batch rows add 0).
    sums, ssqs = pl.pallas_call(
        _bn1d_stats_kernel,
        out_shape=(
            jax.ShapeDtypeStruct((1, f_pad), jnp.float32),
            jax.ShapeDtypeStruct((1, f_pad), jnp.float32),
        ),
        grid_spec=pltpu.PrefetchScalarGridSpec(
            num_scalar_prefetch=0,
            grid=(fg, ng),
            in_specs=[pl.BlockSpec((nb, fb), lambda j, i: (i, j))],
            out_specs=(
                pl.BlockSpec((1, fb), lambda j, i: (0, j)),
                pl.BlockSpec((1, fb), lambda j, i: (0, j)),
            ),
        ),
        compiler_params=pltpu.CompilerParams(
            dimension_semantics=("parallel", "arbitrary"),
            vmem_limit_bytes=vmem_limit,
        ),
    )(x_p)

    inv_n = 1.0 / n  # true batch size (padding rows are zeros)
    mean = sums * inv_n
    var = jnp.maximum(ssqs * inv_n - mean * mean, 0.0)
    inv_std = lax.rsqrt(var + EPS)
    scale = g_p.reshape(1, f_pad).astype(jnp.float32) * inv_std
    shift = b_p.reshape(1, f_pad).astype(jnp.float32) - mean * scale

    # Pass 2: normalize with per-feature scale/shift.
    y = pl.pallas_call(
        _bn1d_norm_kernel,
        out_shape=jax.ShapeDtypeStruct((n_pad, f_pad), x.dtype),
        grid_spec=pltpu.PrefetchScalarGridSpec(
            num_scalar_prefetch=0,
            grid=(ng, fg),
            in_specs=[
                pl.BlockSpec((nb, fb), lambda i, j: (i, j)),
                pl.BlockSpec((1, fb), lambda i, j: (0, j)),
                pl.BlockSpec((1, fb), lambda i, j: (0, j)),
            ],
            out_specs=pl.BlockSpec((nb, fb), lambda i, j: (i, j)),
        ),
        compiler_params=pltpu.CompilerParams(
            dimension_semantics=("parallel", "parallel"),
            vmem_limit_bytes=vmem_limit,
        ),
    )(x_p, scale, shift)
    return y[:n, :f]


def batchnorm1d_forward(x, gamma, beta, *, f_block=None, two_pass=None,
                        vmem_budget_bytes=DEFAULT_VMEM_BUDGET,
                        vmem_limit_bytes=DEFAULT_VMEM_LIMIT):
    """BatchNorm1d forward with batch statistics.

    x: (N, F); gamma, beta: (F,). Returns (N, F).
    """
    assert x.ndim == 2
    n, f = x.shape
    assert gamma.shape == (f,) and beta.shape == (f,)

    itemsize = jnp.dtype(x.dtype).itemsize
    # Per-feature-column footprint of the single-pass kernel:
    # double-buffered input + output tiles plus ~3 f32 temporaries per element.
    per_col = n * (2 * itemsize + 2 * itemsize + 12)
    fb_budget = (vmem_budget_bytes // per_col) // LANE * LANE

    if two_pass is None:
        two_pass = fb_budget < 4 * LANE  # full-batch tiles no longer pay off
    if f_block is not None:
        two_pass = False

    if two_pass:
        return _two_pass(x, gamma, beta, vmem_budget_bytes, vmem_limit_bytes)

    if f_block is not None:
        fb = max(LANE, (f_block // LANE) * LANE)
    else:
        fb = min(max(fb_budget, LANE), 2048)

    f_lane = _round_up(f, LANE)
    fb = min(fb, f_lane)
    # Keep >=2 feature-grid steps when possible (v7x dual-TC sharding).
    if fb >= f_lane and f_lane >= 2 * LANE:
        fb = ((f_lane // 2) // LANE) * LANE

    return _one_pass(x, gamma, beta, fb, vmem_limit_bytes)


# --------------------------------------------------------------------------
# Reference + self-test
# --------------------------------------------------------------------------
def _reference(x, gamma, beta):
    mean = jnp.mean(x, axis=0, keepdims=True)
    var = jnp.mean((x - mean) ** 2, axis=0, keepdims=True)
    return (x - mean) / jnp.sqrt(var + EPS) * gamma + beta


if __name__ == "__main__":
    key = jax.random.PRNGKey(0)

    # Small shapes consistent with the module: batch=8, num_features=256.
    N, F = 8, 256
    x = jax.random.normal(key, (N, F), dtype=jnp.float32) * 2.0 + 0.5
    gamma = jnp.ones((F,), dtype=jnp.float32)   # matches module __init__
    beta = jnp.zeros((F,), dtype=jnp.float32)

    y = jax.block_until_ready(batchnorm1d_forward(x, gamma, beta))
    assert jnp.allclose(y, _reference(x, gamma, beta), atol=1e-4, rtol=1e-4), \
        "one-pass mismatch vs reference"

    # Also exercise the non-multiple-of-128 F path (lane padding).
    N2, F2 = 16, 200
    x2 = jax.random.normal(jax.random.PRNGKey(1), (N2, F2), dtype=jnp.float32)
    g2 = jnp.ones((F2,), dtype=jnp.float32)
    b2 = jnp.zeros((F2,), dtype=jnp.float32)
    y2 = jax.block_until_ready(batchnorm1d_forward(x2, g2, b2))
    assert jnp.allclose(y2, _reference(x2, g2, b2), atol=1e-4, rtol=1e-4), \
        "padded-F mismatch vs reference"

    # Exercise the two-pass (large-N) path at a small shape by forcing it.
    N3, F3 = 64, 384
    x3 = jax.random.normal(jax.random.PRNGKey(2), (N3, F3), dtype=jnp.float32) * 1.5 - 0.3
    g3 = jnp.ones((F3,), dtype=jnp.float32)
    b3 = jnp.zeros((F3,), dtype=jnp.float32)
    y3 = jax.block_until_ready(batchnorm1d_forward(x3, g3, b3, two_pass=True))
    assert jnp.allclose(y3, _reference(x3, g3, b3), atol=1e-4, rtol=1e-4), \
        "two-pass mismatch vs reference"

    print("KERNEL_OK")
</pallas_src>

<mosaic_0001>
module attributes {stable_mosaic.version = 11 : i64} {
  func.func @_bn1d_fused_kernel(%arg0: i32, %arg1: memref<8x128xf32, #tpu.memory_space<vmem>>, %arg2: memref<1x128xf32, #tpu.memory_space<vmem>>, %arg3: memref<1x128xf32, #tpu.memory_space<vmem>>, %arg4: memref<8x128xf32, #tpu.memory_space<vmem>>) attributes {dimension_semantics = [#tpu.dimension_semantics<parallel>], iteration_bounds = array<i64: 2>, scalar_prefetch = 0 : i64, scratch_operands = 0 : i64, tpu.core_type = #tpu.core_type<tc>, window_params = [{transform_indices = @transform_0, window_bounds = array<i64: 8, 128>}, {transform_indices = @transform_1, window_bounds = array<i64: 1, 128>}, {transform_indices = @transform_2, window_bounds = array<i64: 1, 128>}, {transform_indices = @transform_3, window_bounds = array<i64: 8, 128>}]} {
    %c0 = arith.constant 0 : index
    %c0_0 = arith.constant 0 : index
    %0 = vector.load %arg1[%c0, %c0_0] : memref<8x128xf32, #tpu.memory_space<vmem>>, vector<8x128xf32>
    %cst = arith.constant dense<0.000000e+00> : vector<128xf32>
    %1 = vector.multi_reduction <add>, %0, %cst [0] : vector<8x128xf32> to vector<128xf32>
    %2 = vector.shape_cast %1 : vector<128xf32> to vector<1x128xf32>
    %cst_1 = arith.constant 1.250000e-01 : f32
    %3 = vector.broadcast %cst_1 : f32 to vector<1x128xf32>
    %4 = arith.mulf %2, %3 : vector<1x128xf32>
    %5 = arith.mulf %0, %0 : vector<8x128xf32>
    %cst_2 = arith.constant dense<0.000000e+00> : vector<128xf32>
    %6 = vector.multi_reduction <add>, %5, %cst_2 [0] : vector<8x128xf32> to vector<128xf32>
    %7 = vector.shape_cast %6 : vector<128xf32> to vector<1x128xf32>
    %cst_3 = arith.constant 1.250000e-01 : f32
    %8 = vector.broadcast %cst_3 : f32 to vector<1x128xf32>
    %9 = arith.mulf %7, %8 : vector<1x128xf32>
    %10 = arith.mulf %4, %4 : vector<1x128xf32>
    %11 = arith.subf %9, %10 : vector<1x128xf32>
    %cst_4 = arith.constant 0.000000e+00 : f32
    %12 = vector.broadcast %cst_4 : f32 to vector<1x128xf32>
    %13 = arith.maximumf %11, %12 : vector<1x128xf32>
    %cst_5 = arith.constant 9.99999974E-6 : f32
    %14 = vector.broadcast %cst_5 : f32 to vector<1x128xf32>
    %15 = arith.addf %13, %14 : vector<1x128xf32>
    %16 = math.rsqrt %15 : vector<1x128xf32>
    %c0_6 = arith.constant 0 : index
    %c0_7 = arith.constant 0 : index
    %17 = vector.load %arg2[%c0_6, %c0_7] : memref<1x128xf32, #tpu.memory_space<vmem>>, vector<1x128xf32>
    %c0_8 = arith.constant 0 : index
    %c0_9 = arith.constant 0 : index
    %18 = vector.load %arg3[%c0_8, %c0_9] : memref<1x128xf32, #tpu.memory_space<vmem>>, vector<1x128xf32>
    %19 = arith.mulf %17, %16 : vector<1x128xf32>
    %20 = arith.mulf %4, %19 : vector<1x128xf32>
    %21 = arith.subf %18, %20 : vector<1x128xf32>
    %22 = vector.broadcast %19 : vector<1x128xf32> to vector<8x128xf32>
    %23 = arith.mulf %0, %22 : vector<8x128xf32>
    %24 = vector.broadcast %21 : vector<1x128xf32> to vector<8x128xf32>
    %25 = arith.addf %23, %24 : vector<8x128xf32>
    %c0_10 = arith.constant 0 : index
    %c0_11 = arith.constant 0 : index
    %26 = vector.load %arg4[%c0_10, %c0_11] : memref<8x128xf32, #tpu.memory_space<vmem>>, vector<8x128xf32>
    tpu.vector_store %arg4[%c0_10, %c0_11], %25 {strides = array<i32>} : memref<8x128xf32, #tpu.memory_space<vmem>>, vector<8x128xf32>,
    return
  }
  func.func @transform_0(%arg0: i32) -> (i32, i32) {
    %c0_i32 = arith.constant 0 : i32
    %c0_i32_0 = arith.constant 0 : i32
    return %c0_i32, %arg0 : i32, i32
  }
  func.func @transform_1(%arg0: i32) -> (i32, i32) {
    %c0_i32 = arith.constant 0 : i32
    %c0_i32_0 = arith.constant 0 : i32
    return %c0_i32, %arg0 : i32, i32
  }
  func.func @transform_2(%arg0: i32) -> (i32, i32) {
    %c0_i32 = arith.constant 0 : i32
    %c0_i32_0 = arith.constant 0 : i32
    return %c0_i32, %arg0 : i32, i32
  }
  func.func @transform_3(%arg0: i32) -> (i32, i32) {
    %c0_i32 = arith.constant 0 : i32
    %c0_i32_0 = arith.constant 0 : i32
    return %c0_i32, %arg0 : i32, i32
  }
}

</mosaic_0001>

<bundles_post_ra>
// kernel: tpu_custom_call.1
= control target key start
LH: loop header
LB: loop body
LE: loop exit
PB: predicated region body
PF: predicated region fallthrough
CT: control target
= control target key end

     0   :  { %8 = vsyncpa [#allocation3], 0  ;;  %s710_s0 = inlined_call_operand.hbm [shape: f32[8,256], index: 0, kind: input, shape index: {}]   ;;  %s711_s1 = inlined_call_operand.vmem [shape: f32[1,256], index: 1, kind: input, shape index: {}]   ;;  %s712_s2 = inlined_call_operand.vmem [shape: f32[1,256], index: 2, kind: input, shape index: {}]   ;;  %s713_s3 = inlined_call_operand.hbm [shape: f32[8,256], index: 3, kind: output, shape index: {}]  }
   0x1   :  { %10 = vsyncpa [#allocation3 + $0x1], 0 }
   0x2   :  { %11 = vsyncpa [#allocation4], 0 }
   0x3   :  { %13 = vsyncpa [#allocation4 + $0x1], 0  ;;  %s537_s12 = smov 0   ;;  %s539_s13 = smov 0  }
   0x4   :  { %s541_s14 = smov 0   ;;  %s543_s15 = smov 0  }
   0x5 LB: > { %s558_s16 = sadd.s32 4294967295, %s513_s15   ;;  %s357_s17 = sadd.s32 4294967294, %s513_s15   ;;  %s513_s15 = sphi %s543_s15, %s728_s15   ;;  %s509_s14 = sphi %s541_s14, %s727_s14   ;;  %s505_s13 = sphi %s539_s13, %s726_s13   ;;  %s501_s12 = sphi %s537_s12, %s725_s12  }
   0x6   : > { %s562_s18 = sadd.s32 1, %s513_s15   ;;  %s26_s19 = sadd.s32 1, %s509_s14 }
   0x7   : > { %s23_s20 = ssub.s32 %s513_s15, %s562_s18  ;;  %p33_p0 = scmp.ne.s32.totalorder %s509_s14, %s505_s13 }
   0x8   : > { %p24_p1 = scmp.eq.s32.totalorder %s23_s20, 0  ;;  %p34_p2 = scmp.eq.s32.totalorder %s513_s15, 0 }
   0x9   : > { %p39_p3 = scmp.ne.s32.totalorder %s505_s13, %s501_s12  ;;  %p40_p4 = scmp.eq.s32.totalorder %s558_s16, 0 }
   0xa   : > { %s574_s21 = scalar_select %p24_p1, %s509_s14, %s26_s19  }
   0xb   : > { %p576_p5 = por %p34_p2, %p33_p0  ;;  %p580_p6 = por %p40_p4, %p39_p3 }
   0xc   : > { %p115_p7 = scmp.eq.s32.totalorder %s558_s16, 1  ;;  %p121_p8 = scmp.eq.s32.totalorder %s357_s17, 1 }
   0xd   : > { %p381_p10 = scmp.lt.s32.totalorder %s513_s15, 2  ;;  %s141_s26 = sand.u32 1, %s509_s14  }
   0xe   : > { %p587_p11 = por %p115_p7, %p33_p0  ;;  %p591_p12 = por %p121_p8, %p39_p3 }
   0xf   : > { %s361_s27 = sshll.u32 %s513_s15, 7  ;;  %s360_s28 = sshll.u32 %s141_s26, 3 }
  0x10   : > { %s717_s24 = scalar_select %p587_p11, 1, 0 }
  0x11   : > { %s718_s25 = scalar_select %p591_p12, 1, 0 }
  0x12   : > { %s600_s4 = scalar_lea.hbm %s710_s0, %s361_s27  ;;  %s145_s5 = scalar_lea.vmem [#allocation2], %s360_s28 }
  0x13   : > { %s152_s6 = sshll.u32 %s145_s5, 4  ;;  %p604_p13 = pnand %p381_p10, %p576_p5  ;;  %s608_s6 = int_to_ptr.vmem [resolvable:$true] %s152_s6 }
  0x14   : > { %s142_s8 = scalar_lea.sflag [#allocation3], %s141_s26  ;;  %s417_s9 = scalar_lea.hbm %s600_s4, 128 }
  0x15   : > { %p418_p2 = scmp.ne.s32.totalorder %s600_s4, %s417_s9  ;;  %p419_p3 = pneg %p604_p13 }
  0x16   : > { %s422_s17 = scalar_lea.hbm %s710_s0, 256  ;;  %p423_p5 = scmp.lt.u32.totalorder %s600_s4, %s710_s0 }
  0x17   : > { %p420_p4 = pnand %p419_p3, %p418_p2  ;;  %p424_p8 = scmp.lt.u32.totalorder %s422_s17, %s417_s9 }
  0x18   : > { %p426_p9 = scmp.lt.u32.totalorder %s417_s9, %s600_s4 }
  0x19   : > { %p421_p7 = pneg %p420_p4  ;;  %p425_p10 = por %p424_p8, %p423_p5 }
  0x1b   : > { %p427_p0 = por %p426_p9, %p425_p10 }
  0x1d   : > { %p428_p1 = pnand %p427_p0, %p421_p7 }
  0x1f   : > { %431 = shalt.err (!%p428_p1)
}
  0x20   : > { %s432_s22 = scalar_lea.vmem %s608_s6, 128  ;;  %s515_s26 = smov [#allocation2]  }
  0x21   : > { %p433_p2 = scmp.ne.s32.totalorder %s608_s6, %s432_s22  ;;  %s437_s27 = sshll.u32 %s515_s26, 4  ;;  %s438_s27 = int_to_ptr.vmem [resolvable:$false] %s437_s27 }
  0x22   : > { %s439_s28 = scalar_lea.vmem %s438_s27, 256  ;;  %p440_p11 = scmp.lt.s32.totalorder %s608_s6, %s438_s27 }
  0x23   : > { %p435_p4 = pnand %p433_p2, %p419_p3  ;;  %p441_p5 = scmp.lt.s32.totalorder %s439_s28, %s432_s22 }
  0x25   : > { %p436_p12 = pneg %p435_p4  ;;  %p442_p8 = por %p441_p5, %p440_p11 }
  0x27   : > { %p443_p9 = pnand %p442_p8, %p436_p12 }
  0x29   : > { %446 = shalt.err (!%p443_p9)
}
  0x2a   : > { %376 = dma.hbm_to_vmem [thread:$0]  (!%p604_p13), %s600_s4, 128, %s608_s6, %s142_s8  }
  0x2b   : > { %p720_p0 = scmp.lt.s32.totalorder %s513_s15, 3  ;;  %p721_p1 = scmp.ge.s32.totalorder %s513_s15, 1 }
  0x2d   : > { %p170_p3 = pnand %p721_p1, %p720_p0 }
  0x2e   : > { %s642_s29 = sand.u32 (!%p170_p3), 1, %s505_s13  }
  0x2f   : > { %173 = sbr.rel (%p170_p3) target bundleno = 113 (0x71), region = 32  ;;  %s363_s30 = sshll.u32 (!%p170_p3), %s642_s29, 3 }
  0x30   : > { %s176_s5 = scalar_lea.sflag (!%p170_p3), [#allocation3], %s642_s29  ;;  %s179_s7 = scalar_lea.vmem (!%p170_p3), [#allocation2], %s363_s30 }
  0x36   : > { %492 = dma.done.wait (%p580_p6), %s176_s5, 128  }
  0x37   : > { %494 = vsyncadd (%p580_p6), %s176_s5, 4294967168  ;;  %v214_v0 = vld [vmem:[%s179_s7] sm:$0xff]  ;;  %p208_p6 = scmp.lt.s32.totalorder %s558_s16, 1  ;;  %v241_v20 = vlaneseq  ;;  %s207_s17 = scalar_lea.vmem [#allocation5], %s363_s30 }
  0x38   : > { %v215_v1 = vrot.slane %v214_v0, 4  ;;  %v222_v2 = vmul.f32 %v214_v0, %v214_v0  ;;  %s269_s19 = sshll.u32 %s207_s17, 4  ;;  %s366_s20 = sshll.u32 %s558_s16, 7  ;;  %s663_s19 = int_to_ptr.vmem [resolvable:$true] %s269_s19 }
  0x39   : > { %s209_s23 = scalar_select %p208_p6, %s558_s16, 1  ;;  %v242_v21 = vshrl.u32 %v241_v20, 7 }
  0x3a   : > { %v216_v3 = vadd.f32 %v215_v1, %v214_v0  ;;  %v223_v4 = vrot.slane %v222_v2, 4  ;;  %s668_s27 = scalar_lea.hbm %s713_s3, %s366_s20  ;;  %s256_s28 = scalar_lea.sflag [#allocation4], %s642_s29 }
  0x3b   : > { %s210_s8 = scalar_lea.vmem %s711_s1, %s209_s23  ;;  %s213_s11 = scalar_lea.vmem %s712_s2, %s209_s23  ;;  %v243_v23 = vsub.s32 0, %v242_v21 }
  0x3c   : > { %v217_v5 = vrot.slane %v216_v3, 2  ;;  %v224_v6 = vadd.f32 %v223_v4, %v222_v2  ;;  %v235_v22 = vld [vmem:[%s210_s8] sm:$0x1]  ;;  %s447_s5 = scalar_lea.vmem %s663_s19, 128  ;;  %p722_p12 = scmp.ne.s32.totalorder %s717_s24, 0 }
  0x3d   : > { %v236_v26 = vld [vmem:[%s213_s11] sm:$0x1]  ;;  %p448_p11 = scmp.ne.s32.totalorder %s663_s19, %s447_s5  ;;  %s516_s16 = smov [#allocation5]  }
  0x3e   : > { %v218_v7 = vadd.f32 %v217_v5, %v216_v3  ;;  %v225_v8 = vrot.slane %v224_v6, 2  ;;  %s451_s30 = sshll.u32 %s516_s16, 4  ;;  %s452_s30 = int_to_ptr.vmem [resolvable:$false] %s451_s30 }
  0x3f   : > { %p449_p13 = pnand %p448_p11, %p722_p12  ;;  %s453_s7 = scalar_lea.vmem %s452_s30, 256 }
  0x40   : > { %v219_v9 = vrot.slane %v218_v7, 1  ;;  %v226_v10 = vadd.f32 %v225_v8, %v224_v6  ;;  %p454_p10 = scmp.lt.s32.totalorder %s663_s19, %s452_s30  ;;  %p455_p2 = scmp.lt.s32.totalorder %s453_s7, %s447_s5 }
  0x41   : > { %p450_p7 = pneg %p449_p13 }
  0x42   : > { %v220_v11 = vadd.f32 %v219_v9, %v218_v7  ;;  %v227_v12 = vrot.slane %v226_v10, 1  ;;  %p456_p4 = por %p455_p2, %p454_p10 }
  0x44   : > { %v221_v13 = vmul.f32 0.125, %v220_v11  ;;  %v228_v14 = vadd.f32 %v227_v12, %v226_v10  ;;  %p457_p5 = pnand %p456_p4, %p450_p7 }
  0x46   : > { %v229_v15 = vmul.f32 0.125, %v228_v14  ;;  %v230_v16 = vmul.f32 %v221_v13, %v221_v13 }
  0x48   : > { %v231_v17 = vsub.f32 %v229_v15, %v230_v16 }
  0x4a   : > { %v232_v18 = vmax.f32 %v231_v17, 0.0 }
  0x4c   : > { %v233_v19 = vadd.f32 1e-05, %v232_v18 }
  0x4e   : > { %415 = vrsqrt.f32 %v233_v19 }
  0x58   : > { %v416_v24 = vpop.eup %415 }
  0x59   : > { %v237_v25 = vmul.f32 %v416_v24, %v235_v22 }
  0x5b   : > { %v238_v27 = vmul.f32 %v237_v25, %v221_v13  ;;  %v244_v28 = vrot.slane %v237_v25, %v243_v23 }
  0x5d   : > { %v239_v29 = vsub.f32 %v236_v26, %v238_v27  ;;  %v246_v30 = vmul.f32 %v244_v28, %v214_v0 }
  0x5f   : > { %v251_v31 = vrot.slane %v239_v29, %v243_v23 }
  0x61   : > { %v253_v32 = vadd.f32 %v251_v31, %v246_v30 }
  0x63   : > { %254 = vst [vmem:[%s207_s17] sm:$0xff] %v253_v32 }
  0x64   : > { %460 = shalt.err (!%p457_p5)
}
  0x65   : > { %s461_s29 = scalar_lea.hbm %s668_s27, 128  ;;  %s465_s6 = scalar_lea.hbm %s713_s3, 256 }
  0x66   : > { %p462_p8 = scmp.ne.s32.totalorder %s668_s27, %s461_s29  ;;  %p466_p1 = scmp.lt.u32.totalorder %s668_s27, %s713_s3 }
  0x67   : > { %p467_p3 = scmp.lt.u32.totalorder %s465_s6, %s461_s29  ;;  %p469_p11 = scmp.lt.u32.totalorder %s461_s29, %s668_s27 }
  0x68   : > { %p463_p9 = pnand %p462_p8, %p722_p12 }
  0x69   : > { %p468_p6 = por %p467_p3, %p466_p1 }
  0x6a   : > { %p464_p0 = pneg %p463_p9 }
  0x6b   : > { %p470_p13 = por %p469_p11, %p468_p6 }
  0x6d   : > { %p471_p7 = pnand %p470_p13, %p464_p0 }
  0x6f   : > { %474 = shalt.err (!%p471_p7)
}
  0x70   : > { %371 = dma.vmem_to_hbm [thread:$0]  (%p722_p12), %s663_s19, 128, %s668_s27, %s256_s28  }
  0x71 PF: > { %s281_s10 = sand.u32 1, %s501_s12   ;;  %p723_p10 = scmp.ne.s32.totalorder %s718_s25, 0 }
  0x72   : > { %p724_p2 = scmp.ge.s32.totalorder %s513_s15, 2  ;;  %s282_s11 = scalar_lea.sflag [#allocation4], %s281_s10 }
  0x74   : > { %p378_p4 = pnand %p724_p2, %p723_p10 }
  0x76   : > { %496 = dma.done.wait (!%p378_p4), %s282_s11, 128  }
  0x77   : > { %498 = vsyncadd (!%p378_p4), %s282_s11, 4294967168  ;;  %p16_p5 = scmp.ge.s32.totalorder %s562_s18, 4   ;;  %s725_s12 = smov %s505_s13 }
  0x78   : > { %s726_s13 = smov %s509_s14  ;;  %s727_s14 = smov %s574_s21 }
  0x79   : > { %s728_s15 = smov %s562_s18  ;;  %18 = sbr.rel (!%p16_p5) target bundleno = 5 (0x5), region = 83 }
  0x80   :  { %287 = vsyncpa [#allocation3], 1 }
  0x81   :  { %289 = vsyncpa [#allocation3 + $0x1], 1 }
  0x82   :  { %290 = vsyncpa [#allocation4], 1 }
  0x83   :  { %292 = vsyncpa [#allocation4 + $0x1], 1 }

</bundles_post_ra>
